<compile_context>
chip_gen: v7x
topology: tpu7x:2x2x1
jax: 0.10.0
libtpu: 0.0.40
codegen_flags: <defaults>
</compile_context>

<pallas_src>
import jax
import jax.numpy as jnp
from jax.experimental import pallas as pl
from jax.experimental.pallas import tpu as pltpu

CAT_DIM = 12
HIDDEN_SIZE = 64


def _d_net_cat_kernel(xt_ref, w1_ref, b1_ref, w2_ref, b2_ref, w3_ref, b3_ref,
                      o_ref):
    """One batch tile.  xt_ref: (cat_dim, TB), o_ref: (1, TB) -- batch on lanes."""
    # lin1 + relu  (dropout is identity in eval mode)
    h1 = jnp.dot(w1_ref[...], xt_ref[...],
                 preferred_element_type=jnp.float32) + b1_ref[...]
    h1 = jnp.maximum(h1, 0.0)
    # lin2 + relu
    h2 = jnp.dot(w2_ref[...], h1.astype(w2_ref.dtype),
                 preferred_element_type=jnp.float32) + b2_ref[...]
    h2 = jnp.maximum(h2, 0.0)
    # lin3 + sigmoid.  Output width is 1: do it on the VPU/XLU (elementwise mul +
    # sublane reduce) instead of wasting an MXU pass on a 1-wide matmul.
    logits = jnp.sum(h2 * w3_ref[...], axis=0, keepdims=True) + b3_ref[0]
    o_ref[...] = jax.nn.sigmoid(logits).astype(o_ref.dtype)


def d_net_cat_forward(x, params, *, tile_b=512, matmul_dtype=jnp.bfloat16):
    """x: (B, cat_dim) float32. params: (in, out) weights and (1, out) biases."""
    B, cat_dim = x.shape
    hidden = params["w1"].shape[1]

    # Batch tile: a multiple of 128 (lane width), big enough to amortise the
    # ~0.35us per-grid-step overhead, tiny in VMEM (a (12, 512) bf16 tile ~ 12 KiB),
    # so it fits every chip's scoped-VMEM default with double buffering.
    tile_b = min(tile_b, pl.cdiv(B, 128) * 128)
    num_tiles = pl.cdiv(B, tile_b)
    b_pad = num_tiles * tile_b

    # One-time layout plumbing in the wrapper: batch onto the lane axis, matmul
    # operands to bf16, weights as (out, in) so each layer is  W @ x_t.
    xt = jnp.zeros((cat_dim, b_pad), matmul_dtype)
    xt = xt.at[:, :B].set(x.T.astype(matmul_dtype))
    w1t = params["w1"].T.astype(matmul_dtype)              # (hidden, cat_dim)
    w2t = params["w2"].T.astype(matmul_dtype)              # (hidden, hidden)
    w3c = params["w3"].astype(jnp.float32)                  # (hidden, 1) f32 epilogue
    b1c = params["b1"].reshape(hidden, 1).astype(jnp.float32)
    b2c = params["b2"].reshape(hidden, 1).astype(jnp.float32)
    b3c = params["b3"].reshape(1).astype(jnp.float32)        # scalar -> SMEM

    flops = 2 * b_pad * (cat_dim * hidden + hidden * hidden + hidden)
    param_bytes = sum(int(a.size) * a.dtype.itemsize
                      for a in (w1t, b1c, w2t, b2c, w3c, b3c))
    bytes_accessed = int(xt.size) * xt.dtype.itemsize + b_pad * 4 + param_bytes

    out_t = pl.pallas_call(
        _d_net_cat_kernel,
        out_shape=jax.ShapeDtypeStruct((1, b_pad), jnp.float32),
        grid=(num_tiles,),
        in_specs=[
            pl.BlockSpec((cat_dim, tile_b), lambda i: (0, i)),   # x tile (streamed)
            pl.BlockSpec((hidden, cat_dim), lambda i: (0, 0)),   # W1   (resident)
            pl.BlockSpec((hidden, 1), lambda i: (0, 0)),         # b1   (resident)
            pl.BlockSpec((hidden, hidden), lambda i: (0, 0)),    # W2   (resident)
            pl.BlockSpec((hidden, 1), lambda i: (0, 0)),         # b2   (resident)
            pl.BlockSpec((hidden, 1), lambda i: (0, 0)),         # w3 col (resident)
            pl.BlockSpec(memory_space=pltpu.MemorySpace.SMEM),   # b3 scalar
        ],
        out_specs=pl.BlockSpec((1, tile_b), lambda i: (0, i)),   # lane-dense store
        compiler_params=pltpu.CompilerParams(
            dimension_semantics=("parallel",),                   # megacore on v7x
        ),
        cost_estimate=pl.CostEstimate(flops=flops,
                                      transcendentals=b_pad,
                                      bytes_accessed=bytes_accessed),
    )(xt, w1t, b1c, w2t, b2c, w3c, b3c)

    return out_t[0, :B].reshape(B, 1)


def init_params(key, cat_dim=CAT_DIM, hidden_size=HIDDEN_SIZE):
    """Deterministic init mirroring nn.Linear's uniform(-1/sqrt(fan_in), +)."""
    ks = jax.random.split(key, 6)

    def lin(kw, kb, fan_in, fan_out):
        bound = 1.0 / jnp.sqrt(float(fan_in))
        w = jax.random.uniform(kw, (fan_in, fan_out), jnp.float32, -bound, bound)
        b = jax.random.uniform(kb, (1, fan_out), jnp.float32, -bound, bound)
        return w, b

    w1, b1 = lin(ks[0], ks[1], cat_dim, hidden_size)
    w2, b2 = lin(ks[2], ks[3], hidden_size, hidden_size)
    w3, b3 = lin(ks[4], ks[5], hidden_size, 1)
    return dict(w1=w1, b1=b1, w2=w2, b2=b2, w3=w3, b3=b3)


def reference_forward(x, p, matmul_dtype=jnp.float32):
    """Pure-JAX reference. matmul_dtype=bf16 matches the kernel's precision choices
    (bf16 matmul operands, f32 accumulation, f32 epilogue, f32 final layer)."""
    c = lambda a: a.astype(matmul_dtype)
    h1 = jnp.maximum(
        jnp.dot(c(x), c(p["w1"]), preferred_element_type=jnp.float32) + p["b1"], 0.0)
    h2 = jnp.maximum(
        jnp.dot(c(h1), c(p["w2"]), preferred_element_type=jnp.float32) + p["b2"], 0.0)
    logits = jnp.dot(h2, p["w3"], preferred_element_type=jnp.float32) + p["b3"]
    return jax.nn.sigmoid(logits)


if __name__ == "__main__":
    key = jax.random.PRNGKey(0)
    k_x, k_p = jax.random.split(key)

    batch = 8
    x = jax.random.normal(k_x, (batch, CAT_DIM), jnp.float32)
    params = init_params(k_p)

    out = d_net_cat_forward(x, params)
    out = jax.block_until_ready(out)
    assert out.shape == (batch, 1)

    # Kernel vs a reference with matched matmul precision (bf16 operands, f32 acc).
    ref_matched = reference_forward(x, params, matmul_dtype=jnp.bfloat16)
    assert jnp.allclose(out, ref_matched, atol=1e-3, rtol=1e-3), (
        "matched-precision mismatch, max abs err = "
        f"{float(jnp.max(jnp.abs(out - ref_matched)))}")

    # Kernel vs full-f32 PyTorch semantics: only bf16 quantisation error remains.
    ref_f32 = reference_forward(x, params)
    assert jnp.allclose(out, ref_f32, atol=3e-2, rtol=0.0), (
        "f32 reference mismatch, max abs err = "
        f"{float(jnp.max(jnp.abs(out - ref_f32)))}")

    # Multi-tile / padded-batch path (3 grid steps, batch not a tile multiple).
    batch2 = 300
    x2 = jax.random.normal(jax.random.PRNGKey(1), (batch2, CAT_DIM), jnp.float32)
    out2 = jax.block_until_ready(d_net_cat_forward(x2, params, tile_b=128))
    ref2 = reference_forward(x2, params, matmul_dtype=jnp.bfloat16)
    assert out2.shape == (batch2, 1)
    assert jnp.allclose(out2, ref2, atol=1e-3, rtol=1e-3), (
        "multi-tile mismatch, max abs err = "
        f"{float(jnp.max(jnp.abs(out2 - ref2)))}")

    print("KERNEL_OK")
</pallas_src>

<mosaic_0001>
module attributes {stable_mosaic.version = 11 : i64} {
  func.func @_d_net_cat_kernel(%arg0: i32, %arg1: memref<12x128xbf16, #tpu.memory_space<vmem>>, %arg2: memref<64x12xbf16, #tpu.memory_space<vmem>>, %arg3: memref<64x1xf32, #tpu.memory_space<vmem>>, %arg4: memref<64x64xbf16, #tpu.memory_space<vmem>>, %arg5: memref<64x1xf32, #tpu.memory_space<vmem>>, %arg6: memref<64x1xf32, #tpu.memory_space<vmem>>, %arg7: memref<1xf32, #tpu.memory_space<smem>>, %arg8: memref<1x128xf32, #tpu.memory_space<vmem>>) attributes {dimension_semantics = [#tpu.dimension_semantics<parallel>], iteration_bounds = array<i64: 1>, scalar_prefetch = 0 : i64, scratch_operands = 0 : i64, tpu.core_type = #tpu.core_type<tc>, window_params = [{transform_indices = @transform_0, window_bounds = array<i64: 12, 128>}, {pipeline_mode = #tpu.pipeline_mode<synchronous>, transform_indices = @transform_1, window_bounds = array<i64: 64, 12>}, {pipeline_mode = #tpu.pipeline_mode<synchronous>, transform_indices = @transform_2, window_bounds = array<i64: 64, 1>}, {pipeline_mode = #tpu.pipeline_mode<synchronous>, transform_indices = @transform_3, window_bounds = array<i64: 64, 64>}, {pipeline_mode = #tpu.pipeline_mode<synchronous>, transform_indices = @transform_4, window_bounds = array<i64: 64, 1>}, {pipeline_mode = #tpu.pipeline_mode<synchronous>, transform_indices = @transform_5, window_bounds = array<i64: 64, 1>}, {transform_indices = @transform_6, window_bounds = array<i64: 1>}, {transform_indices = @transform_7, window_bounds = array<i64: 1, 128>}]} {
    %c0 = arith.constant 0 : index
    %c0_0 = arith.constant 0 : index
    %0 = vector.load %arg2[%c0, %c0_0] : memref<64x12xbf16, #tpu.memory_space<vmem>>, vector<64x12xbf16>
    %c0_1 = arith.constant 0 : index
    %c0_2 = arith.constant 0 : index
    %1 = vector.load %arg1[%c0_1, %c0_2] : memref<12x128xbf16, #tpu.memory_space<vmem>>, vector<12x128xbf16>
    %cst = arith.constant dense<0.000000e+00> : vector<64x128xf32>
    %2 = tpu.matmul %0, %1, %cst {dimension_numbers = #tpu.dot_dimension_numbers<[1], [0], [0], [1], [0, 0, 1, 1], [], []>} : vector<64x12xbf16>, vector<12x128xbf16>, vector<64x128xf32> -> vector<64x128xf32>
    %c0_3 = arith.constant 0 : index
    %c0_4 = arith.constant 0 : index
    %3 = vector.load %arg3[%c0_3, %c0_4] : memref<64x1xf32, #tpu.memory_space<vmem>>, vector<64x1xf32>
    %4 = vector.broadcast %3 : vector<64x1xf32> to vector<64x128xf32>
    %5 = arith.addf %2, %4 : vector<64x128xf32>
    %cst_5 = arith.constant 0.000000e+00 : f32
    %6 = vector.broadcast %cst_5 : f32 to vector<64x128xf32>
    %7 = arith.maximumf %5, %6 : vector<64x128xf32>
    %c0_6 = arith.constant 0 : index
    %c0_7 = arith.constant 0 : index
    %8 = vector.load %arg4[%c0_6, %c0_7] : memref<64x64xbf16, #tpu.memory_space<vmem>>, vector<64x64xbf16>
    %9 = arith.truncf %7 : vector<64x128xf32> to vector<64x128xbf16>
    %cst_8 = arith.constant dense<0.000000e+00> : vector<64x128xf32>
    %10 = tpu.matmul %8, %9, %cst_8 {dimension_numbers = #tpu.dot_dimension_numbers<[1], [0], [0], [1], [0, 0, 1, 1], [], []>} : vector<64x64xbf16>, vector<64x128xbf16>, vector<64x128xf32> -> vector<64x128xf32>
    %c0_9 = arith.constant 0 : index
    %c0_10 = arith.constant 0 : index
    %11 = vector.load %arg5[%c0_9, %c0_10] : memref<64x1xf32, #tpu.memory_space<vmem>>, vector<64x1xf32>
    %12 = vector.broadcast %11 : vector<64x1xf32> to vector<64x128xf32>
    %13 = arith.addf %10, %12 : vector<64x128xf32>
    %cst_11 = arith.constant 0.000000e+00 : f32
    %14 = vector.broadcast %cst_11 : f32 to vector<64x128xf32>
    %15 = arith.maximumf %13, %14 : vector<64x128xf32>
    %c0_12 = arith.constant 0 : index
    %c0_13 = arith.constant 0 : index
    %16 = vector.load %arg6[%c0_12, %c0_13] : memref<64x1xf32, #tpu.memory_space<vmem>>, vector<64x1xf32>
    %17 = vector.broadcast %16 : vector<64x1xf32> to vector<64x128xf32>
    %18 = arith.mulf %15, %17 : vector<64x128xf32>
    %cst_14 = arith.constant dense<0.000000e+00> : vector<128xf32>
    %19 = vector.multi_reduction <add>, %18, %cst_14 [0] : vector<64x128xf32> to vector<128xf32>
    %20 = vector.shape_cast %19 : vector<128xf32> to vector<1x128xf32>
    %c0_15 = arith.constant 0 : index
    %21 = memref.load %arg7[%c0_15] : memref<1xf32, #tpu.memory_space<smem>>
    %22 = vector.broadcast %21 : f32 to vector<1x128xf32>
    %23 = arith.addf %20, %22 : vector<1x128xf32>
    %24 = arith.negf %23 : vector<1x128xf32>
    %25 = math.exp %24 : vector<1x128xf32>
    %cst_16 = arith.constant 1.000000e+00 : f32
    %26 = vector.broadcast %cst_16 : f32 to vector<1x128xf32>
    %27 = arith.addf %26, %25 : vector<1x128xf32>
    %28 = arith.divf %26, %27 : vector<1x128xf32>
    %c0_17 = arith.constant 0 : index
    %c0_18 = arith.constant 0 : index
    %29 = vector.load %arg8[%c0_17, %c0_18] : memref<1x128xf32, #tpu.memory_space<vmem>>, vector<1x128xf32>
    tpu.vector_store %arg8[%c0_17, %c0_18], %28 {strides = array<i32>} : memref<1x128xf32, #tpu.memory_space<vmem>>, vector<1x128xf32>,
    return
  }
  func.func @transform_0(%arg0: i32) -> (i32, i32) {
    %c0_i32 = arith.constant 0 : i32
    %c0_i32_0 = arith.constant 0 : i32
    return %c0_i32, %arg0 : i32, i32
  }
  func.func @transform_1(%arg0: i32) -> (i32, i32) {
    %c0_i32 = arith.constant 0 : i32
    %c0_i32_0 = arith.constant 0 : i32
    %c0_i32_1 = arith.constant 0 : i32
    return %c0_i32, %c0_i32_0 : i32, i32
  }
  func.func @transform_2(%arg0: i32) -> (i32, i32) {
    %c0_i32 = arith.constant 0 : i32
    %c0_i32_0 = arith.constant 0 : i32
    %c0_i32_1 = arith.constant 0 : i32
    return %c0_i32, %c0_i32_0 : i32, i32
  }
  func.func @transform_3(%arg0: i32) -> (i32, i32) {
    %c0_i32 = arith.constant 0 : i32
    %c0_i32_0 = arith.constant 0 : i32
    %c0_i32_1 = arith.constant 0 : i32
    return %c0_i32, %c0_i32_0 : i32, i32
  }
  func.func @transform_4(%arg0: i32) -> (i32, i32) {
    %c0_i32 = arith.constant 0 : i32
    %c0_i32_0 = arith.constant 0 : i32
    %c0_i32_1 = arith.constant 0 : i32
    return %c0_i32, %c0_i32_0 : i32, i32
  }
  func.func @transform_5(%arg0: i32) -> (i32, i32) {
    %c0_i32 = arith.constant 0 : i32
    %c0_i32_0 = arith.constant 0 : i32
    %c0_i32_1 = arith.constant 0 : i32
    return %c0_i32, %c0_i32_0 : i32, i32
  }
  func.func @transform_6(%arg0: i32) -> i32 {
    %c0_i32 = arith.constant 0 : i32
    %c0_i32_0 = arith.constant 0 : i32
    return %c0_i32 : i32
  }
  func.func @transform_7(%arg0: i32) -> (i32, i32) {
    %c0_i32 = arith.constant 0 : i32
    %c0_i32_0 = arith.constant 0 : i32
    return %c0_i32, %arg0 : i32, i32
  }
}

</mosaic_0001>

<bundles_post_ra>
// kernel: tpu_custom_call.1
= control target key start
LH: loop header
LB: loop body
LE: loop exit
PB: predicated region body
PF: predicated region fallthrough
CT: control target
= control target key end

     0   :  { %vm125_vm0 = vcmask 1045504   ;;  %vm112_vm1 = vcmask 97280   ;;  %v568_v5 = vmov 0   ;;  %s732_s0 = inlined_call_operand.vmem [shape: bf16[12,128], index: 0, kind: input, shape index: {}]   ;;  %s733_s1 = inlined_call_operand.vmem [shape: bf16[64,12], index: 1, kind: input, shape index: {}]   ;;  %s734_s2 = inlined_call_operand.vmem [shape: f32[64,1], index: 2, kind: input, shape index: {}]   ;;  %s735_s3 = inlined_call_operand.vmem [shape: bf16[64,64], index: 3, kind: input, shape index: {}]   ;;  %s736_s4 = inlined_call_operand.vmem [shape: f32[64,1], index: 4, kind: input, shape index: {}]   ;;  %s737_s5 = inlined_call_operand.vmem [shape: f32[64,1], index: 5, kind: input, shape index: {}]   ;;  %s738_s6 = inlined_call_operand.<no memory space> [shape: f32[1], index: 6, kind: input, shape index: {}]   ;;  %s739_s7 = inlined_call_operand.hbm [shape: f32[1,128], index: 7, kind: output, shape index: {}]  }
   0x1   :  { %v531_v0 = vld [vmem:[%s732_s0] sm:$0x3f]   ;;  %v533_v3 = vld [vmem:[%s733_s1 + $0x8] sm:$0xff]   ;;  %v534_v4 = vld [vmem:[%s733_s1 + $0x10] sm:$0xff]   ;;  %529 = vset.pattern.permute.xlu0 %v568_v5  ;;  %530 = vset.pattern.permute.xlu1 %v568_v5 }
   0x2   :  { %v532_v1 = vld [vmem:[%s733_s1] sm:$0xff]   ;;  %526 = vmatprep.subr.msk.bf16.mxu0 %vm125_vm0, %v531_v0  ;;  %v127_v2 = vsel %vm125_vm0, %v531_v0, 0  ;;  %v41_v7 = vld [vmem:[%s734_s2 + $0x10] sm:$0xff]  ;;  %v40_v8 = vld [vmem:[%s734_s2 + $0x8] sm:$0xff] }
   0x3   :  { %493 = vmatpush3.bf16.msra.mxu0 %v127_v2  ;;  %494 = vmatprep.mubr.msk.bf16.mxu0 %vm112_vm1, %v532_v1  ;;  %v39_v6 = vld [vmem:[%s734_s2] sm:$0xff]  ;;  %v42_v9 = vld [vmem:[%s734_s2 + $0x18] sm:$0xff]  ;;  %v44_v12 = vld [vmem:[%s734_s2 + $0x28] sm:$0xff] }
   0x4   :  { %49 = vperm.xlu0 %529, %v39_v6   ;;  %59 = vperm.xlu1 %530, %v41_v7   ;;  %v535_v10 = vld [vmem:[%s733_s1 + $0x18] sm:$0xff]   ;;  %v43_v11 = vld [vmem:[%s734_s2 + $0x20] sm:$0xff]  ;;  %v45_v13 = vld [vmem:[%s734_s2 + $0x30] sm:$0xff] }
   0x5   :  { %v46_v14 = vld [vmem:[%s734_s2 + $0x38] sm:$0xff] }
   0x6   :  { %495 = vmatmul.mubr.msk.bf16.vlgmr.msra.gmra.mrb[0].mxu0 %vm112_vm1, %v533_v3 }
   0x7   :  { %498 = vmatprep.mubr.msk.bf16.mxu0 %vm112_vm1, %v534_v4 }
   0x8   :  { %54 = vperm.xlu0 %529, %v40_v8   ;;  %64 = vperm.xlu1 %530, %v42_v9  }
   0xc   :  { %69 = vperm.xlu0 %529, %v43_v11   ;;  %74 = vperm.xlu1 %530, %v44_v12  }
   0xe   :  { %499 = vmatmul.mubr.msk.bf16.gmra.mrb[4].mxu0 %vm112_vm1, %v535_v10 }
   0xf   :  { %13 = vsyncpa [#allocation4], 0  ;;  %v214_v15 = vld [vmem:[%s736_s4] sm:$0xff]  ;;  %v215_v16 = vld [vmem:[%s736_s4 + $0x8] sm:$0xff]  ;;  %vm282_vm2 = vcmask 523264   ;;  %s569_s13 = smov [#allocation3]  }
  0x10   :  { %79 = vperm.xlu0 %529, %v45_v13   ;;  %84 = vperm.xlu1 %530, %v46_v14   ;;  %v216_v17 = vld [vmem:[%s736_s4 + $0x10] sm:$0xff]  ;;  %v217_v18 = vld [vmem:[%s736_s4 + $0x18] sm:$0xff]  ;;  %v368_v19 = vld [vmem:[%s737_s5] sm:$0xff]  ;;  %s453_s14 = sshll.u32 %s569_s13, 4  ;;  %s454_s14 = int_to_ptr.vmem [resolvable:$true] %s453_s14 }
  0x11   :  { %v369_v20 = vld [vmem:[%s737_s5 + $0x8] sm:$0xff]  ;;  %v218_v21 = vld [vmem:[%s736_s4 + $0x20] sm:$0xff]  ;;  %v370_v22 = vld [vmem:[%s737_s5 + $0x10] sm:$0xff]  ;;  %s544_s15 = scalar_lea.vmem %s454_s14, 16  ;;  %s548_s16 = scalar_lea.vmem %s454_s14, 32 }
  0x12   :  { %v219_v23 = vld [vmem:[%s736_s4 + $0x28] sm:$0xff]  ;;  %v371_v24 = vld [vmem:[%s737_s5 + $0x18] sm:$0xff]  ;;  %v220_v25 = vld [vmem:[%s736_s4 + $0x30] sm:$0xff]  ;;  %p545_p0 = scmp.ne.s32.totalorder %s454_s14, %s544_s15  ;;  %p549_p1 = scmp.lt.s32.totalorder %s454_s14, %s454_s14 }
  0x13   :  { %v372_v26 = vld [vmem:[%s737_s5 + $0x20] sm:$0xff]  ;;  %v221_v27 = vld [vmem:[%s736_s4 + $0x38] sm:$0xff]  ;;  %v373_v28 = vld [vmem:[%s737_s5 + $0x28] sm:$0xff]  ;;  %p550_p2 = scmp.lt.s32.totalorder %s548_s16, %s544_s15 }
  0x14   :  { %224 = vperm.xlu0 %529, %v214_v15   ;;  %229 = vperm.xlu1 %530, %v215_v16   ;;  %v374_v29 = vld [vmem:[%s737_s5 + $0x30] sm:$0xff]  ;;  %v375_v30 = vld [vmem:[%s737_s5 + $0x38] sm:$0xff]  ;;  %v536_v31 = vld [vmem:[%s735_s3] sm:$0xff]  }
  0x15   :  { %v537_v32 = vld [vmem:[%s735_s3 + $0x10] sm:$0xff]   ;;  %510 = vmatprep.mubr.msk.bf16.mxu0 %vm282_vm2, %v536_v31  ;;  %v538_v5 = vld [vmem:[%s735_s3 + $0x8] sm:$0xff]   ;;  %v539_v6 = vld [vmem:[%s735_s3 + $0x18] sm:$0xff]   ;;  %p551_p3 = por %p550_p2, %p549_p1 }
  0x16   :  { %514 = vmatprep.mubr.msk.bf16.mxu1 %vm282_vm2, %v537_v32 }
  0x17   :  { %p552_p4 = pnand %p551_p3, %p545_p0 }
  0x18   :  { %234 = vperm.xlu0 %529, %v216_v17   ;;  %239 = vperm.xlu1 %530, %v217_v18  }
  0x1c   :  { %378 = vperm.xlu0 %529, %v368_v19   ;;  %383 = vperm.xlu1 %530, %v369_v20  }
  0x20   :  { %244 = vperm.xlu0 %529, %v218_v21   ;;  %388 = vperm.xlu1 %530, %v370_v22  }
  0x24   :  { %249 = vperm.xlu0 %529, %v219_v23   ;;  %393 = vperm.xlu1 %530, %v371_v24  }
  0x28   :  { %254 = vperm.xlu0 %529, %v220_v25   ;;  %398 = vperm.xlu1 %530, %v372_v26  }
  0x2c   :  { %259 = vperm.xlu0 %529, %v221_v27   ;;  %403 = vperm.xlu1 %530, %v373_v28  }
  0x30   :  { %408 = vperm.xlu0 %529, %v374_v29   ;;  %413 = vperm.xlu1 %530, %v375_v30  }
  0x83   :  { %v50_v33 = vpop.permute.xlu0 %49  ;;  %v60_v34 = vpop.permute.xlu1 %59 }
  0x87   :  { %v55_v35 = vpop.permute.xlu0 %54  ;;  %v65_v36 = vpop.permute.xlu1 %64 }
  0x8b   :  { %v70_v40 = vpop.permute.xlu0 %69  ;;  %v75_v45 = vpop.permute.xlu1 %74 }
  0x8f   :  { %v80_v52 = vpop.permute.xlu0 %79  ;;  %v85_v57 = vpop.permute.xlu1 %84 }
  0x93   :  { %v225_v7 = vpop.permute.xlu0 %224  ;;  %v230_v8 = vpop.permute.xlu1 %229 }
  0x97   :  { %v235_v9 = vpop.permute.xlu0 %234  ;;  %v240_v10 = vpop.permute.xlu1 %239 }
  0x9b   :  { %v379_v11 = vpop.permute.xlu0 %378  ;;  %v384_v12 = vpop.permute.xlu1 %383 }
  0x9f   :  { %v245_v13 = vpop.permute.xlu0 %244  ;;  %v389_v14 = vpop.permute.xlu1 %388 }
  0xa3   :  { %v250_v15 = vpop.permute.xlu0 %249  ;;  %v394_v16 = vpop.permute.xlu1 %393 }
  0xa7   :  { %v255_v30 = vpop.permute.xlu0 %254 }
  0xd9   :  { %v496_v37 = vpop.f32.mrb[0].mxu0 }
  0xda   :  { %v172_v38 = vadd.f32 %v496_v37, %v60_v34  ;;  %v163_v39 = vpop.f32.mrb[1].mxu0  ;;  %v399_v34 = vpop.permute.xlu1 %398 }
  0xdb   :  { %v164_v41 = vadd.f32 %v163_v39, %v50_v33  ;;  %v497_v42 = vpop.f32.mrb[2].mxu0 }
  0xdc   :  { %v175_v43 = vadd.f32 %v497_v42, %v65_v36  ;;  %v166_v44 = vpop.f32.mrb[3].mxu0  ;;  %v196_v47 = vmax.f32 %v172_v38, 0.0 }
  0xdd   :  { %v167_v46 = vadd.f32 %v166_v44, %v55_v35  ;;  %v194_v49 = vmax.f32 %v164_v41, 0.0 }
  0xde   :  { %v197_v48 = vmax.f32 %v175_v43, 0.0  ;;  %v260_v43 = vpop.permute.xlu0 %259 }
  0xdf   :  { %v195_v50 = vmax.f32 %v167_v46, 0.0 }
  0xe0   :  { %v211_v51 = vpack.c.bf16 %v197_v48, %v196_v47  ;;  %v404_v48 = vpop.permute.xlu1 %403 }
  0xe1   :  { %v210_v53 = vpack.c.bf16 %v195_v50, %v194_v49  ;;  %v500_v54 = vpop.f32.mrb[4].mxu0 }
  0xe2   :  { %v188_v55 = vadd.f32 %v500_v54, %v80_v52  ;;  %v179_v56 = vpop.f32.mrb[5].mxu0 }
  0xe3   :  { %v180_v58 = vadd.f32 %v179_v56, %v70_v40  ;;  %v501_v59 = vpop.f32.mrb[6].mxu0  ;;  %502 = vmatprep.subr.bf16.mxu0 %v210_v53  ;;  %518 = vmatprep.subr.bf16.mxu1 %v210_v53 }
  0xe4   :  { %v191_v60 = vadd.f32 %v501_v59, %v85_v57  ;;  %v182_v61 = vpop.f32.mrb[7].mxu0  ;;  %503 = vmatpush3.bf16.msra.mxu0 %v210_v53  ;;  %522 = vmatpush3.bf16.msra.mxu1 %v210_v53  ;;  %v200_v63 = vmax.f32 %v188_v55, 0.0  ;;  %v409_v55 = vpop.permute.xlu0 %408 }
  0xe5   :  { %v183_v62 = vadd.f32 %v182_v61, %v75_v45  ;;  %504 = vmatprep.subr.bf16.mxu0 %v211_v51  ;;  %519 = vmatprep.subr.bf16.mxu1 %v211_v51  ;;  %v198_v1 = vmax.f32 %v180_v58, 0.0  ;;  %v414_v58 = vpop.permute.xlu1 %413 }
  0xe6   :  { %v201_v0 = vmax.f32 %v191_v60, 0.0 }
  0xe7   :  { %v199_v2 = vmax.f32 %v183_v62, 0.0 }
  0xe8   :  { %v213_v3 = vpack.c.bf16 %v201_v0, %v200_v63  ;;  %505 = vmatpush3.bf16.msra.mxu0 %v211_v51  ;;  %523 = vmatpush3.bf16.msra.mxu1 %v211_v51 }
  0xe9   :  { %v212_v4 = vpack.c.bf16 %v199_v2, %v198_v1 }
  0xeb   :  { %506 = vmatprep.subr.bf16.mxu0 %v212_v4  ;;  %520 = vmatprep.subr.bf16.mxu1 %v212_v4 }
  0xec   :  { %507 = vmatpush3.bf16.msra.mxu0 %v212_v4  ;;  %524 = vmatpush3.bf16.msra.mxu1 %v212_v4 }
  0xed   :  { %508 = vmatprep.subr.bf16.mxu0 %v213_v3  ;;  %521 = vmatprep.subr.bf16.mxu1 %v213_v3 }
  0xf0   :  { %509 = vmatpush3.bf16.msra.mxu0 %v213_v3  ;;  %525 = vmatpush3.bf16.msra.mxu1 %v213_v3  ;;  %v438_v3 = vstv %s738_s6 }
  0xf3   :  { %511 = vmatmul.mubr.msk.bf16.vlgmr.msra.gmra.mrb[8].mxu0 %vm282_vm2, %v538_v5  ;;  %515 = vmatmul.mubr.msk.bf16.vlgmr.msra.gmra.mrb[0].mxu1 %vm282_vm2, %v539_v6 }
 0x1c6   :  { %v512_v17 = vpop.f32.mrb[8].mxu0  ;;  %v516_v18 = vpop.f32.mrb[0].mxu1 }
 0x1c7   :  { %v329_v19 = vpop.f32.mrb[9].mxu0  ;;  %v345_v20 = vpop.f32.mrb[1].mxu1  ;;  %v338_v21 = vadd.f32 %v512_v17, %v235_v9  ;;  %v354_v40 = vadd.f32 %v516_v18, %v255_v30 }
 0x1c8   :  { %v330_v22 = vadd.f32 %v329_v19, %v225_v7  ;;  %v513_v23 = vpop.f32.mrb[10].mxu0  ;;  %v517_v24 = vpop.f32.mrb[2].mxu1  ;;  %v346_v32 = vadd.f32 %v345_v20, %v245_v13 }
 0x1c9   :  { %v332_v25 = vpop.f32.mrb[11].mxu0  ;;  %v348_v26 = vpop.f32.mrb[3].mxu1  ;;  %v341_v28 = vadd.f32 %v513_v23, %v240_v10  ;;  %v362_v31 = vmax.f32 %v338_v21, 0.0  ;;  %v357_v45 = vadd.f32 %v517_v24, %v260_v43  ;;  %v366_v49 = vmax.f32 %v354_v40, 0.0 }
 0x1ca   :  { %v360_v27 = vmax.f32 %v330_v22, 0.0  ;;  %v333_v29 = vadd.f32 %v332_v25, %v230_v8  ;;  %v349_v38 = vadd.f32 %v348_v26, %v250_v15  ;;  %v364_v41 = vmax.f32 %v346_v32, 0.0 }
 0x1cb   :  { %v363_v36 = vmax.f32 %v341_v28, 0.0  ;;  %v418_v39 = vmul.f32 %v389_v14, %v362_v31  ;;  %v367_v52 = vmax.f32 %v357_v45, 0.0  ;;  %v422_v56 = vmul.f32 %v409_v55, %v366_v49 }
 0x1cc   :  { %v361_v33 = vmax.f32 %v333_v29, 0.0  ;;  %v416_v35 = vmul.f32 %v379_v11, %v360_v27  ;;  %v365_v47 = vmax.f32 %v349_v38, 0.0  ;;  %v420_v50 = vmul.f32 %v399_v34, %v364_v41 }
 0x1cd   :  { %v419_v44 = vmul.f32 %v394_v16, %v363_v36  ;;  %v423_v59 = vmul.f32 %v414_v58, %v367_v52 }
 0x1ce   :  { %v417_v37 = vmul.f32 %v384_v12, %v361_v33  ;;  %v421_v53 = vmul.f32 %v404_v48, %v365_v47 }
 0x1d0   :  { %v424_v42 = vadd.f32 %v417_v37, %v416_v35 }
 0x1d2   :  { %v425_v46 = vadd.f32 %v424_v42, %v418_v39 }
 0x1d4   :  { %v426_v51 = vadd.f32 %v425_v46, %v419_v44 }
 0x1d6   :  { %v427_v54 = vadd.f32 %v426_v51, %v420_v50 }
 0x1d8   :  { %v428_v57 = vadd.f32 %v427_v54, %v421_v53 }
 0x1da   :  { %v429_v60 = vadd.f32 %v428_v57, %v422_v56 }
 0x1dc   :  { %v430_v61 = vadd.f32 %v429_v60, %v423_v59 }
 0x1de   :  { %v431_v62 = vrot.slane %v430_v61, 4 }
 0x1e0   :  { %v432_v63 = vadd.f32 %v431_v62, %v430_v61 }
 0x1e2   :  { %v433_v0 = vrot.slane %v432_v63, 2 }
 0x1e4   :  { %v434_v1 = vadd.f32 %v433_v0, %v432_v63 }
 0x1e6   :  { %v435_v2 = vrot.slane %v434_v1, 1 }
 0x1e8   :  { %v436_v4 = vadd.f32 %v435_v2, %v434_v1 }
 0x1ea   :  { %v439_v5 = vadd.f32 %v438_v3, %v436_v4 }
 0x1ec   :  { %v478_v6 = vmul.f32 -1.442695, %v439_v5 }
 0x1ee   :  { %540 = vpow2.f32 %v478_v6 }
 0x1f8   :  { %v541_v7 = vpop.eup %540 }
 0x1f9   :  { %v443_v8 = vadd.f32 1.0, %v541_v7 }
 0x1fb   :  { %542 = vrcp.f32 %v443_v8 }
 0x205   :  { %v543_v9 = vpop.eup %542 }
 0x206   :  { %446 = vst [vmem:[#allocation3] sm:$0x1] %v543_v9 }
 0x207   :  { %555 = shalt.err (!%p552_p4)
}
 0x208   :  { %s556_s18 = scalar_lea.hbm %s739_s7, 16 }
 0x209   :  { %p557_p5 = scmp.ne.s32.totalorder %s739_s7, %s556_s18  ;;  %p560_p6 = scmp.lt.u32.totalorder %s556_s18, %s739_s7 }
 0x20b   :  { %p562_p7 = pnand %p560_p6, %p557_p5 }
 0x20d   :  { %565 = shalt.err (!%p562_p7)
}
 0x20e   :  { %456 = dma.vmem_to_hbm [thread:$0]  %s454_s14, 16, %s739_s7, [#allocation4]  }
 0x20f   :  { %566 = dma.done.wait [#allocation4], 16  }
 0x210   :  { %567 = vsyncadd [#allocation4], 4294967280 }
 0x211   :  { %460 = vsyncpa [#allocation4], 1 }

</bundles_post_ra>
